<compile_context>
chip_gen: v6e
topology: v6e:2x2x1
jax: 0.10.0
libtpu: 0.0.40
codegen_flags: <defaults>
</compile_context>

<pallas_src>
import functools

import numpy as np
import jax
import jax.numpy as jnp
from jax import lax
from jax.experimental import pallas as pl
from jax.experimental.pallas import tpu as pltpu

_EPS = 1e-15


def _phase_corr_kernel(t_ref, s_ref, cwsw_f_ref, chsh_f_ref,
                       chsh_i_ref, cwsw_i_ref, *rest, trans):
    if trans:
        mask_ref, r_ref = rest
    else:
        (r_ref,) = rest

    bb, H, W = t_ref.shape

    # Default MXU precision (bf16 multiply passes, f32 accumulate).
    # Fall back to precision=lax.Precision.HIGH if tighter accuracy is needed.
    dot = functools.partial(jnp.dot, preferred_element_type=jnp.float32)

    cwsw_f = cwsw_f_ref[...]          # (W, 2W)  [CW | SW]            forward
    chsh_f = chsh_f_ref[...]          # (H, 2H)  [CH | SH]            forward
    chsh_i = chsh_i_ref[...]          # (H, 2H)  fftshift-rolled cols inverse
    cwsw_i = cwsw_i_ref[...]          # (W, 2W)  fftshift-rolled cols inverse

    # ---- forward DFT along W:  y = x @ (CW - i SW); template & source stacked
    z2 = jnp.concatenate([t_ref[...].reshape(bb * H, W),
                          s_ref[...].reshape(bb * H, W)], axis=0)    # (2bbH, W)
    za = dot(z2, cwsw_f)                                             # (2bbH, 2W)
    y_re = za[:, :W]
    y_im = -za[:, W:]

    # ---- forward DFT along H (transposed layout, CH/SH symmetric):
    #      G^T_re = y_re^T CH + y_im^T SH ;  G^T_im = y_im^T CH - y_re^T SH
    ystk = jnp.concatenate([y_re, y_im], axis=0).reshape(4 * bb, H, W)
    ystk_t = jnp.swapaxes(ystk, 1, 2).reshape(4 * bb * W, H)         # (4bbW, H)
    yb = dot(ystk_t, chsh_f)                                         # (4bbW, 2H)
    nre = 2 * bb * W
    gt_re = yb[:nre, :H] + yb[nre:, H:]
    gt_im = yb[nre:, :H] - yb[:nre, H:]

    nb = bb * W
    ga_re, gb_re = gt_re[:nb], gt_re[nb:]     # template / source spectra (W,H)^T
    ga_im, gb_im = gt_im[:nb], gt_im[nb:]

    # ---- normalised cross-power spectrum (elementwise, layout-agnostic)
    r_re = ga_re * gb_re + ga_im * gb_im
    r_im = ga_re * gb_im - gb_re * ga_im
    r0 = jnp.sqrt((ga_re * ga_re + ga_im * ga_im + _EPS) *
                  (gb_re * gb_re + gb_im * gb_im + _EPS))
    inv = pl.reciprocal(r0 + _EPS, approx=True)
    r_re = r_re * inv
    r_im = r_im * inv

    # ---- inverse DFT along H (still transposed); fftshift folded into chsh_i
    qb = dot(jnp.concatenate([r_re, r_im], axis=0), chsh_i)          # (2bbW, 2H)
    q_re = qb[:nb, :H] - qb[nb:, H:]          # R^T CH - R^T_im SH
    q_im = qb[:nb, H:] + qb[nb:, :H]          # R^T SH + R^T_im CH

    # ---- inverse DFT along W (back to (bb,H,W)); fftshift folded into cwsw_i
    qstk = jnp.concatenate([q_re, q_im], axis=0).reshape(2 * bb, W, H)
    qstk_t = jnp.swapaxes(qstk, 1, 2).reshape(2 * bb * H, W)         # (2bbH, W)
    fb = dot(qstk_t, cwsw_i)                                         # (2bbH, 2W)
    mh = bb * H
    inv_n = 1.0 / (H * W)                      # torch.ifft normalisation
    rr = (fb[:mh, :W] - fb[mh:, W:]) * inv_n
    ri = (fb[:mh, W:] + fb[mh:, :W]) * inv_n

    r = jnp.sqrt(rr * rr + ri * ri + _EPS).reshape(bb, H, W)

    if trans:
        # 60-pixel border zeroing (mirrors torch `trans` branch; note the mask
        # is all-zero for H or W <= 120, same degenerate behaviour as torch).
        r = r * mask_ref[...]

    r_ref[...] = r


def _dft_mats(n):
    """Forward [C | S] matrix and the fftshift-folded inverse [C | S] matrix."""
    k = np.arange(n)
    ang = 2.0 * np.pi * np.outer(k, k) / n
    c = np.cos(ang)
    s = np.sin(ang)
    n_shift = n // 2 + (n % 2)                # roll_n shift of fftshift2d
    fwd = np.concatenate([c, s], axis=1).astype(np.float32)
    inv = np.concatenate([np.roll(c, -n_shift, axis=1),
                          np.roll(s, -n_shift, axis=1)], axis=1).astype(np.float32)
    return jnp.asarray(fwd), jnp.asarray(inv)


def _choose_batch_block(B, H, W, budget_bytes=20 * 1024 * 1024):
    """Largest divisor of B whose estimated VMEM footprint fits the budget."""
    per_elem = 28 * H * W * 4     # ~peak live f32 planes incl. pipeline buffers
    cap = max(1, budget_bytes // per_elem)
    bb = 1
    for d in range(1, B + 1):
        if B % d == 0 and d <= cap:
            bb = d
    return bb


def phase_corr(template, source, logbase, trans=False):
    template = jnp.asarray(template, jnp.float32)
    source = jnp.asarray(source, jnp.float32)
    B, H, W = template.shape

    bb = _choose_batch_block(B, H, W)
    cwsw_f, cwsw_i = _dft_mats(W)
    chsh_f, chsh_i = _dft_mats(H)

    in_specs = [
        pl.BlockSpec((bb, H, W), lambda b: (b, 0, 0)),   # template block
        pl.BlockSpec((bb, H, W), lambda b: (b, 0, 0)),   # source block
        pl.BlockSpec((W, 2 * W), lambda b: (0, 0)),      # [CW|SW] forward
        pl.BlockSpec((H, 2 * H), lambda b: (0, 0)),      # [CH|SH] forward
        pl.BlockSpec((H, 2 * H), lambda b: (0, 0)),      # [CH|SH] inverse+shift
        pl.BlockSpec((W, 2 * W), lambda b: (0, 0)),      # [CW|SW] inverse+shift
    ]
    args = [template, source, cwsw_f, chsh_f, chsh_i, cwsw_i]
    if trans:
        row = np.arange(H)[:, None]
        col = np.arange(W)[None, :]
        keep = ((row >= 60) & (row < H - 60) & (col >= 60) & (col < W - 60))
        in_specs.append(pl.BlockSpec((H, W), lambda b: (0, 0)))
        args.append(jnp.asarray(keep.astype(np.float32)))

    kernel = functools.partial(_phase_corr_kernel, trans=trans)
    r = pl.pallas_call(
        kernel,
        grid=(B // bb,),
        in_specs=in_specs,
        out_specs=pl.BlockSpec((bb, H, W), lambda b: (b, 0, 0)),
        out_shape=jax.ShapeDtypeStruct((B, H, W), jnp.float32),
        compiler_params=pltpu.CompilerParams(
            dimension_semantics=("parallel",),
            vmem_limit_bytes=32 * 1024 * 1024),
    )(*args)

    # Tiny per-batch reductions / argmax post-processing stay in plain JAX
    # (r is a lane-dense slab in HBM; these are trivial XLA reductions).
    angle_sum = jnp.sum(r, axis=2)            # (B, H) : torch.sum(r, dim=2)
    scale_sum = jnp.sum(r, axis=1)            # (B, W) : torch.sum(r, dim=1)
    angle_idx = jnp.argmax(angle_sum, axis=-1)
    scale_idx = jnp.argmax(scale_sum, axis=-1)

    if not trans:
        angle = angle_idx.astype(jnp.float32) * 180.0 / H
        angle = jnp.where(angle > 90.0, angle - 90.0, angle + 90.0)
        sca_f = scale_idx.astype(jnp.float32) - (W // 2)
        scale = 1.0 / jnp.power(logbase, sca_f)
    else:
        angle = angle_idx
        scale = scale_idx

    return [angle, scale, r, logbase]


class PhaseCorr:
    """JAX/Pallas port of unet/pytorch_DPCN.py::PhaseCorr (device arg dropped)."""

    def __init__(self, logbase, trans=False):
        self.logbase = logbase
        self.trans = trans

    def __call__(self, template, source):
        return phase_corr(template, source, self.logbase, trans=self.trans)


if __name__ == "__main__":
    B, H, W = 2, 16, 16
    key = jax.random.PRNGKey(0)
    k1, k2 = jax.random.split(key)
    template = jax.random.normal(k1, (B, H, W), dtype=jnp.float32)
    source = jax.random.normal(k2, (B, H, W), dtype=jnp.float32)
    logbase = jnp.float32(1.1)   # deterministic stand-in for the DPCN logbase tensor

    module = PhaseCorr(logbase, trans=False)
    angle, scale, r, lb = module(template, source)
    jax.block_until_ready((angle, scale, r, lb))

    # reference check for the correlation surface using jnp.fft
    eps = 1e-15
    Ga = jnp.fft.fft2(template)
    Gb = jnp.fft.fft2(source)
    R_re = Ga.real * Gb.real + Ga.imag * Gb.imag
    R_im = Ga.real * Gb.imag - Gb.real * Ga.imag
    r0 = jnp.sqrt(Ga.real ** 2 + Ga.imag ** 2 + eps) * \
         jnp.sqrt(Gb.real ** 2 + Gb.imag ** 2 + eps)
    Rc = (R_re + 1j * R_im) / (r0 + eps)
    rc = jnp.fft.ifft2(Rc)
    r_ref = jnp.sqrt(rc.real ** 2 + rc.imag ** 2 + eps)
    r_ref = jnp.roll(r_ref, (-(H // 2 + H % 2), -(W // 2 + W % 2)), axis=(1, 2))
    # default-precision MXU (bf16 multiplies, f32 accumulate) + approx
    # reciprocal -> slightly looser tolerance than exact f32.
    np.testing.assert_allclose(np.asarray(r), np.asarray(r_ref),
                               atol=2e-3, rtol=2e-2)

    print("KERNEL_OK")
</pallas_src>

<mosaic_0001>
module attributes {stable_mosaic.version = 11 : i64} {
  func.func @_phase_corr_kernel(%arg0: i32, %arg1: memref<2x16x16xf32, #tpu.memory_space<vmem>>, %arg2: memref<2x16x16xf32, #tpu.memory_space<vmem>>, %arg3: memref<16x32xf32, #tpu.memory_space<vmem>>, %arg4: memref<16x32xf32, #tpu.memory_space<vmem>>, %arg5: memref<16x32xf32, #tpu.memory_space<vmem>>, %arg6: memref<16x32xf32, #tpu.memory_space<vmem>>, %arg7: memref<2x16x16xf32, #tpu.memory_space<vmem>>) attributes {dimension_semantics = [#tpu.dimension_semantics<parallel>], iteration_bounds = array<i64: 1>, scalar_prefetch = 0 : i64, scratch_operands = 0 : i64, tpu.core_type = #tpu.core_type<tc>, window_params = [{transform_indices = @transform_0, window_bounds = array<i64: 2, 16, 16>}, {transform_indices = @transform_1, window_bounds = array<i64: 2, 16, 16>}, {pipeline_mode = #tpu.pipeline_mode<synchronous>, transform_indices = @transform_2, window_bounds = array<i64: 16, 32>}, {pipeline_mode = #tpu.pipeline_mode<synchronous>, transform_indices = @transform_3, window_bounds = array<i64: 16, 32>}, {pipeline_mode = #tpu.pipeline_mode<synchronous>, transform_indices = @transform_4, window_bounds = array<i64: 16, 32>}, {pipeline_mode = #tpu.pipeline_mode<synchronous>, transform_indices = @transform_5, window_bounds = array<i64: 16, 32>}, {transform_indices = @transform_6, window_bounds = array<i64: 2, 16, 16>}]} {
    %c0 = arith.constant 0 : index
    %c0_0 = arith.constant 0 : index
    %0 = vector.load %arg3[%c0, %c0_0] : memref<16x32xf32, #tpu.memory_space<vmem>>, vector<16x32xf32>
    %c0_1 = arith.constant 0 : index
    %c0_2 = arith.constant 0 : index
    %1 = vector.load %arg4[%c0_1, %c0_2] : memref<16x32xf32, #tpu.memory_space<vmem>>, vector<16x32xf32>
    %c0_3 = arith.constant 0 : index
    %c0_4 = arith.constant 0 : index
    %2 = vector.load %arg5[%c0_3, %c0_4] : memref<16x32xf32, #tpu.memory_space<vmem>>, vector<16x32xf32>
    %c0_5 = arith.constant 0 : index
    %c0_6 = arith.constant 0 : index
    %3 = vector.load %arg6[%c0_5, %c0_6] : memref<16x32xf32, #tpu.memory_space<vmem>>, vector<16x32xf32>
    %c0_7 = arith.constant 0 : index
    %c0_8 = arith.constant 0 : index
    %c0_9 = arith.constant 0 : index
    %4 = vector.load %arg1[%c0_7, %c0_8, %c0_9] : memref<2x16x16xf32, #tpu.memory_space<vmem>>, vector<2x16x16xf32>
    %5 = vector.shape_cast %4 : vector<2x16x16xf32> to vector<32x16xf32>
    %c0_10 = arith.constant 0 : index
    %c0_11 = arith.constant 0 : index
    %c0_12 = arith.constant 0 : index
    %6 = vector.load %arg2[%c0_10, %c0_11, %c0_12] : memref<2x16x16xf32, #tpu.memory_space<vmem>>, vector<2x16x16xf32>
    %7 = vector.shape_cast %6 : vector<2x16x16xf32> to vector<32x16xf32>
    %8 = tpu.concatenate %5, %7 in 0 : vector<32x16xf32>, vector<32x16xf32> -> vector<64x16xf32>
    %cst = arith.constant dense<0.000000e+00> : vector<64x32xf32>
    %9 = tpu.matmul %8, %0, %cst {dimension_numbers = #tpu.dot_dimension_numbers<[1], [0], [0], [1], [0, 0, 1, 1], [], []>} : vector<64x16xf32>, vector<16x32xf32>, vector<64x32xf32> -> vector<64x32xf32>
    %10 = vector.extract_strided_slice %9 {offsets = [0, 0], sizes = [64, 16], strides = [1, 1]} : vector<64x32xf32> to vector<64x16xf32>
    %11 = vector.extract_strided_slice %9 {offsets = [0, 16], sizes = [64, 16], strides = [1, 1]} : vector<64x32xf32> to vector<64x16xf32>
    %cst_13 = arith.constant 0.000000e+00 : f32
    %12 = vector.broadcast %cst_13 : f32 to vector<64x16xf32>
    %13 = arith.subf %12, %11 : vector<64x16xf32>
    %14 = tpu.concatenate %10, %13 in 0 : vector<64x16xf32>, vector<64x16xf32> -> vector<128x16xf32>
    %15 = vector.shape_cast %14 : vector<128x16xf32> to vector<8x16x16xf32>
    %16 = tpu.transpose %15, [0, 2, 1] : vector<8x16x16xf32> -> vector<8x16x16xf32>
    %17 = vector.shape_cast %16 : vector<8x16x16xf32> to vector<128x16xf32>
    %cst_14 = arith.constant dense<0.000000e+00> : vector<128x32xf32>
    %18 = tpu.matmul %17, %1, %cst_14 {dimension_numbers = #tpu.dot_dimension_numbers<[1], [0], [0], [1], [0, 0, 1, 1], [], []>} : vector<128x16xf32>, vector<16x32xf32>, vector<128x32xf32> -> vector<128x32xf32>
    %19 = vector.extract_strided_slice %18 {offsets = [0, 0], sizes = [64, 16], strides = [1, 1]} : vector<128x32xf32> to vector<64x16xf32>
    %20 = vector.extract_strided_slice %18 {offsets = [64, 16], sizes = [64, 16], strides = [1, 1]} : vector<128x32xf32> to vector<64x16xf32>
    %21 = arith.addf %19, %20 : vector<64x16xf32>
    %22 = vector.extract_strided_slice %18 {offsets = [64, 0], sizes = [64, 16], strides = [1, 1]} : vector<128x32xf32> to vector<64x16xf32>
    %23 = vector.extract_strided_slice %18 {offsets = [0, 16], sizes = [64, 16], strides = [1, 1]} : vector<128x32xf32> to vector<64x16xf32>
    %24 = arith.subf %22, %23 : vector<64x16xf32>
    %25 = vector.extract_strided_slice %21 {offsets = [0, 0], sizes = [32, 16], strides = [1, 1]} : vector<64x16xf32> to vector<32x16xf32>
    %26 = vector.extract_strided_slice %21 {offsets = [32, 0], sizes = [32, 16], strides = [1, 1]} : vector<64x16xf32> to vector<32x16xf32>
    %27 = vector.extract_strided_slice %24 {offsets = [0, 0], sizes = [32, 16], strides = [1, 1]} : vector<64x16xf32> to vector<32x16xf32>
    %28 = vector.extract_strided_slice %24 {offsets = [32, 0], sizes = [32, 16], strides = [1, 1]} : vector<64x16xf32> to vector<32x16xf32>
    %29 = arith.mulf %25, %26 : vector<32x16xf32>
    %30 = arith.mulf %27, %28 : vector<32x16xf32>
    %31 = arith.addf %29, %30 : vector<32x16xf32>
    %32 = arith.mulf %25, %28 : vector<32x16xf32>
    %33 = arith.mulf %26, %27 : vector<32x16xf32>
    %34 = arith.subf %32, %33 : vector<32x16xf32>
    %35 = arith.mulf %25, %25 : vector<32x16xf32>
    %36 = arith.mulf %27, %27 : vector<32x16xf32>
    %37 = arith.addf %35, %36 : vector<32x16xf32>
    %cst_15 = arith.constant 1.000000e-15 : f32
    %38 = vector.broadcast %cst_15 : f32 to vector<32x16xf32>
    %39 = arith.addf %37, %38 : vector<32x16xf32>
    %40 = arith.mulf %26, %26 : vector<32x16xf32>
    %41 = arith.mulf %28, %28 : vector<32x16xf32>
    %42 = arith.addf %40, %41 : vector<32x16xf32>
    %cst_16 = arith.constant 1.000000e-15 : f32
    %43 = vector.broadcast %cst_16 : f32 to vector<32x16xf32>
    %44 = arith.addf %42, %43 : vector<32x16xf32>
    %45 = arith.mulf %39, %44 : vector<32x16xf32>
    %46 = math.sqrt %45 : vector<32x16xf32>
    %cst_17 = arith.constant 1.000000e-15 : f32
    %47 = vector.broadcast %cst_17 : f32 to vector<32x16xf32>
    %48 = arith.addf %46, %47 : vector<32x16xf32>
    %49 = tpu.reciprocal %48 {approx = true} : vector<32x16xf32> -> vector<32x16xf32>
    %50 = arith.mulf %31, %49 : vector<32x16xf32>
    %51 = arith.mulf %34, %49 : vector<32x16xf32>
    %52 = tpu.concatenate %50, %51 in 0 : vector<32x16xf32>, vector<32x16xf32> -> vector<64x16xf32>
    %cst_18 = arith.constant dense<0.000000e+00> : vector<64x32xf32>
    %53 = tpu.matmul %52, %2, %cst_18 {dimension_numbers = #tpu.dot_dimension_numbers<[1], [0], [0], [1], [0, 0, 1, 1], [], []>} : vector<64x16xf32>, vector<16x32xf32>, vector<64x32xf32> -> vector<64x32xf32>
    %54 = vector.extract_strided_slice %53 {offsets = [0, 0], sizes = [32, 16], strides = [1, 1]} : vector<64x32xf32> to vector<32x16xf32>
    %55 = vector.extract_strided_slice %53 {offsets = [32, 16], sizes = [32, 16], strides = [1, 1]} : vector<64x32xf32> to vector<32x16xf32>
    %56 = arith.subf %54, %55 : vector<32x16xf32>
    %57 = vector.extract_strided_slice %53 {offsets = [0, 16], sizes = [32, 16], strides = [1, 1]} : vector<64x32xf32> to vector<32x16xf32>
    %58 = vector.extract_strided_slice %53 {offsets = [32, 0], sizes = [32, 16], strides = [1, 1]} : vector<64x32xf32> to vector<32x16xf32>
    %59 = arith.addf %57, %58 : vector<32x16xf32>
    %60 = tpu.concatenate %56, %59 in 0 : vector<32x16xf32>, vector<32x16xf32> -> vector<64x16xf32>
    %61 = vector.shape_cast %60 : vector<64x16xf32> to vector<4x16x16xf32>
    %62 = tpu.transpose %61, [0, 2, 1] : vector<4x16x16xf32> -> vector<4x16x16xf32>
    %63 = vector.shape_cast %62 : vector<4x16x16xf32> to vector<64x16xf32>
    %cst_19 = arith.constant dense<0.000000e+00> : vector<64x32xf32>
    %64 = tpu.matmul %63, %3, %cst_19 {dimension_numbers = #tpu.dot_dimension_numbers<[1], [0], [0], [1], [0, 0, 1, 1], [], []>} : vector<64x16xf32>, vector<16x32xf32>, vector<64x32xf32> -> vector<64x32xf32>
    %65 = vector.extract_strided_slice %64 {offsets = [0, 0], sizes = [32, 16], strides = [1, 1]} : vector<64x32xf32> to vector<32x16xf32>
    %66 = vector.extract_strided_slice %64 {offsets = [32, 16], sizes = [32, 16], strides = [1, 1]} : vector<64x32xf32> to vector<32x16xf32>
    %67 = arith.subf %65, %66 : vector<32x16xf32>
    %cst_20 = arith.constant 3.906250e-03 : f32
    %68 = vector.broadcast %cst_20 : f32 to vector<32x16xf32>
    %69 = arith.mulf %67, %68 : vector<32x16xf32>
    %70 = vector.extract_strided_slice %64 {offsets = [0, 16], sizes = [32, 16], strides = [1, 1]} : vector<64x32xf32> to vector<32x16xf32>
    %71 = vector.extract_strided_slice %64 {offsets = [32, 0], sizes = [32, 16], strides = [1, 1]} : vector<64x32xf32> to vector<32x16xf32>
    %72 = arith.addf %70, %71 : vector<32x16xf32>
    %cst_21 = arith.constant 3.906250e-03 : f32
    %73 = vector.broadcast %cst_21 : f32 to vector<32x16xf32>
    %74 = arith.mulf %72, %73 : vector<32x16xf32>
    %75 = arith.mulf %69, %69 : vector<32x16xf32>
    %76 = arith.mulf %74, %74 : vector<32x16xf32>
    %77 = arith.addf %75, %76 : vector<32x16xf32>
    %cst_22 = arith.constant 1.000000e-15 : f32
    %78 = vector.broadcast %cst_22 : f32 to vector<32x16xf32>
    %79 = arith.addf %77, %78 : vector<32x16xf32>
    %80 = math.sqrt %79 : vector<32x16xf32>
    %81 = vector.shape_cast %80 : vector<32x16xf32> to vector<2x16x16xf32>
    %c0_23 = arith.constant 0 : index
    %c0_24 = arith.constant 0 : index
    %c0_25 = arith.constant 0 : index
    %82 = vector.load %arg7[%c0_23, %c0_24, %c0_25] : memref<2x16x16xf32, #tpu.memory_space<vmem>>, vector<2x16x16xf32>
    tpu.vector_store %arg7[%c0_23, %c0_24, %c0_25], %81 {strides = array<i32>} : memref<2x16x16xf32, #tpu.memory_space<vmem>>, vector<2x16x16xf32>,
    return
  }
  func.func @transform_0(%arg0: i32) -> (i32, i32, i32) {
    %c0_i32 = arith.constant 0 : i32
    %c0_i32_0 = arith.constant 0 : i32
    %c0_i32_1 = arith.constant 0 : i32
    return %arg0, %c0_i32, %c0_i32_0 : i32, i32, i32
  }
  func.func @transform_1(%arg0: i32) -> (i32, i32, i32) {
    %c0_i32 = arith.constant 0 : i32
    %c0_i32_0 = arith.constant 0 : i32
    %c0_i32_1 = arith.constant 0 : i32
    return %arg0, %c0_i32, %c0_i32_0 : i32, i32, i32
  }
  func.func @transform_2(%arg0: i32) -> (i32, i32) {
    %c0_i32 = arith.constant 0 : i32
    %c0_i32_0 = arith.constant 0 : i32
    %c0_i32_1 = arith.constant 0 : i32
    return %c0_i32, %c0_i32_0 : i32, i32
  }
  func.func @transform_3(%arg0: i32) -> (i32, i32) {
    %c0_i32 = arith.constant 0 : i32
    %c0_i32_0 = arith.constant 0 : i32
    %c0_i32_1 = arith.constant 0 : i32
    return %c0_i32, %c0_i32_0 : i32, i32
  }
  func.func @transform_4(%arg0: i32) -> (i32, i32) {
    %c0_i32 = arith.constant 0 : i32
    %c0_i32_0 = arith.constant 0 : i32
    %c0_i32_1 = arith.constant 0 : i32
    return %c0_i32, %c0_i32_0 : i32, i32
  }
  func.func @transform_5(%arg0: i32) -> (i32, i32) {
    %c0_i32 = arith.constant 0 : i32
    %c0_i32_0 = arith.constant 0 : i32
    %c0_i32_1 = arith.constant 0 : i32
    return %c0_i32, %c0_i32_0 : i32, i32
  }
  func.func @transform_6(%arg0: i32) -> (i32, i32, i32) {
    %c0_i32 = arith.constant 0 : i32
    %c0_i32_0 = arith.constant 0 : i32
    %c0_i32_1 = arith.constant 0 : i32
    return %arg0, %c0_i32, %c0_i32_0 : i32, i32, i32
  }
}

</mosaic_0001>

<bundles_post_ra>
// kernel: tpu_custom_call.1
= control target key start
LH: loop header
LB: loop body
LE: loop exit
PB: predicated region body
PF: predicated region fallthrough
CT: control target
= control target key end

     0   :  { %11 = vsyncpa [#allocation3], 0  ;;  %s2141_s0 = inlined_call_operand.hbm [shape: f32[2,16,16], index: 0, kind: input, shape index: {}]   ;;  %s2142_s1 = inlined_call_operand.hbm [shape: f32[2,16,16], index: 1, kind: input, shape index: {}]   ;;  %s2143_s2 = inlined_call_operand.hbm [shape: f32[16,32], index: 2, kind: input, shape index: {}]   ;;  %s2144_s3 = inlined_call_operand.hbm [shape: f32[16,32], index: 3, kind: input, shape index: {}]   ;;  %s2145_s4 = inlined_call_operand.hbm [shape: f32[16,32], index: 4, kind: input, shape index: {}]   ;;  %s2146_s5 = inlined_call_operand.hbm [shape: f32[16,32], index: 5, kind: input, shape index: {}]   ;;  %s2147_s6 = inlined_call_operand.hbm [shape: f32[2,16,16], index: 6, kind: output, shape index: {}]  }
   0x1   :  { %12 = vsyncpa [#allocation6], 0 }
   0x2   :  { %13 = vsyncpa [#allocation9], 0 }
   0x3   :  { %14 = vsyncpa [#allocation12], 0 }
   0x4   :  { %15 = vsyncpa [#allocation4], 0  ;;  %s1845_s21 = smov [#allocation5]   ;;  %s1846_s23 = smov [#allocation8]  }
   0x5   :  { %s33_s22 = sshll.u32 %s1845_s21, 4  ;;  %s57_s24 = sshll.u32 %s1846_s23, 4  ;;  %s34_s22 = int_to_ptr.vmem [resolvable:$true] %s33_s22  ;;  %s58_s24 = int_to_ptr.vmem [resolvable:$true] %s57_s24 }
   0x6   :  { %s1703_s25 = scalar_lea.vmem %s34_s22, 512  ;;  %p1708_p1 = scmp.lt.s32.totalorder %s34_s22, %s34_s22 }
   0x7   :  { %p1704_p0 = scmp.ne.s32.totalorder %s34_s22, %s1703_s25  ;;  %p1709_p2 = scmp.lt.s32.totalorder %s1703_s25, %s1703_s25 }
   0x9   :  { %p1710_p3 = por %p1709_p2, %p1708_p1 }
   0xb   :  { %p1711_p4 = pnand %p1710_p3, %p1704_p0 }
   0xd   :  { %1714 = shalt.err (!%p1711_p4)
}
   0xe   :  { %s1847_s26 = smov 128   ;;  %s1848_s27 = smov 8  }
   0xf   :  { %39 = dma.hbm_to_vmem [thread:$0]  %s2142_s1, 512, %s34_s22, [#allocation6], %s1847_s26, %s1847_s26, %s1848_s27  }
  0x10   :  { %s1723_s30 = scalar_lea.vmem %s58_s24, 256  ;;  %p1728_p6 = scmp.lt.s32.totalorder %s58_s24, %s58_s24 }
  0x11   :  { %p1724_p5 = scmp.ne.s32.totalorder %s58_s24, %s1723_s30  ;;  %p1729_p7 = scmp.lt.s32.totalorder %s1723_s30, %s1723_s30 }
  0x13   :  { %p1730_p8 = por %p1729_p7, %p1728_p6 }
  0x15   :  { %p1731_p9 = pnand %p1730_p8, %p1724_p5 }
  0x17   :  { %1734 = shalt.err (!%p1731_p9)
}
  0x18   :  { %63 = dma.hbm_to_vmem [thread:$0]  %s2144_s3, 256, %s58_s24, [#allocation9], %s1847_s26, %s1847_s26, %s1848_s27  }
  0x19   :  { %s1849_s9 = smov [#allocation2]   ;;  %s1850_s11 = smov [#allocation7]  }
  0x1a   :  { %s21_s10 = sshll.u32 %s1849_s9, 4  ;;  %s45_s12 = sshll.u32 %s1850_s11, 4  ;;  %s22_s10 = int_to_ptr.vmem [resolvable:$true] %s21_s10  ;;  %s46_s12 = int_to_ptr.vmem [resolvable:$true] %s45_s12 }
  0x1b   :  { %s1743_s1 = scalar_lea.vmem %s22_s10, 512  ;;  %p1748_p11 = scmp.lt.s32.totalorder %s22_s10, %s22_s10 }
  0x1c   :  { %p1744_p10 = scmp.ne.s32.totalorder %s22_s10, %s1743_s1  ;;  %p1749_p12 = scmp.lt.s32.totalorder %s1743_s1, %s1743_s1 }
  0x1e   :  { %p1750_p13 = por %p1749_p12, %p1748_p11 }
  0x20   :  { %p1751_p0 = pnand %p1750_p13, %p1744_p10 }
  0x22   :  { %1754 = shalt.err (!%p1751_p0)
}
  0x23   :  { %27 = dma.hbm_to_vmem [thread:$0]  %s2141_s0, 512, %s22_s10, [#allocation3], %s1847_s26, %s1847_s26, %s1848_s27  }
  0x24   :  { %s1763_s3 = scalar_lea.vmem %s46_s12, 256  ;;  %p1768_p2 = scmp.lt.s32.totalorder %s46_s12, %s46_s12 }
  0x25   :  { %p1764_p1 = scmp.ne.s32.totalorder %s46_s12, %s1763_s3  ;;  %p1769_p3 = scmp.lt.s32.totalorder %s1763_s3, %s1763_s3 }
  0x27   :  { %p1770_p4 = por %p1769_p3, %p1768_p2 }
  0x29   :  { %p1771_p5 = pnand %p1770_p4, %p1764_p1 }
  0x2b   :  { %1774 = shalt.err (!%p1771_p5)
}
  0x2c   :  { %51 = dma.hbm_to_vmem [thread:$0]  %s2143_s2, 256, %s46_s12, [#allocation6], %s1847_s26, %s1847_s26, %s1848_s27  }
  0x2d   :  { %s1851_s17 = smov [#allocation10]   ;;  %s1852_s19 = smov [#allocation11]  }
  0x2e   :  { %s69_s18 = sshll.u32 %s1851_s17, 4  ;;  %s81_s20 = sshll.u32 %s1852_s19, 4  ;;  %s70_s18 = int_to_ptr.vmem [resolvable:$true] %s69_s18  ;;  %s82_s20 = int_to_ptr.vmem [resolvable:$true] %s81_s20 }
  0x2f   :  { %s1783_s0 = scalar_lea.vmem %s70_s18, 256  ;;  %p1788_p7 = scmp.lt.s32.totalorder %s70_s18, %s70_s18 }
  0x30   :  { %p1784_p6 = scmp.ne.s32.totalorder %s70_s18, %s1783_s0  ;;  %p1789_p8 = scmp.lt.s32.totalorder %s1783_s0, %s1783_s0 }
  0x32   :  { %p1790_p9 = por %p1789_p8, %p1788_p7 }
  0x34   :  { %p1791_p10 = pnand %p1790_p9, %p1784_p6 }
  0x36   :  { %1794 = shalt.err (!%p1791_p10)
}
  0x37   :  { %75 = dma.hbm_to_vmem [thread:$0]  %s2145_s4, 256, %s70_s18, [#allocation9], %s1847_s26, %s1847_s26, %s1848_s27  }
  0x38   :  { %s1803_s2 = scalar_lea.vmem %s82_s20, 256  ;;  %p1808_p12 = scmp.lt.s32.totalorder %s82_s20, %s82_s20 }
  0x39   :  { %p1804_p11 = scmp.ne.s32.totalorder %s82_s20, %s1803_s2  ;;  %p1809_p13 = scmp.lt.s32.totalorder %s1803_s2, %s1803_s2 }
  0x3b   :  { %p1810_p0 = por %p1809_p13, %p1808_p12 }
  0x3d   :  { %p1811_p1 = pnand %p1810_p0, %p1804_p11 }
  0x3f   :  { %1814 = shalt.err (!%p1811_p1)
}
  0x40   :  { %87 = dma.hbm_to_vmem [thread:$0]  %s2146_s5, 256, %s82_s20, [#allocation12], %s1847_s26, %s1847_s26, %s1848_s27  }
  0x41   :  { %1835 = dma.done.wait [#allocation3], 512  }
  0x42   :  { %1836 = vsyncadd [#allocation3], 4294966784 }
  0x43   :  { %1837 = dma.done.wait [#allocation6], 768  }
  0x44   :  { %1838 = vsyncadd [#allocation6], 4294966528 }
  0x45   :  { %1839 = dma.done.wait [#allocation9], 512  }
  0x46   :  { %1840 = vsyncadd [#allocation9], 4294966784 }
  0x47   :  { %1841 = dma.done.wait [#allocation12], 256  }
  0x48   :  { %1842 = vsyncadd [#allocation12], 4294967040  ;;  %v107_v0 = vld [vmem:[#allocation7 + $0x8] sm:$0xff]  ;;  %v106_v1 = vld [vmem:[#allocation7] sm:$0xff]  ;;  %vm122_vm0 = vcmask 130048   ;;  %s1853_s4 = smov 112  }
  0x49   :  { %1579 = vmatprep.subr.mxu0 %v107_v0  ;;  %1655 = vmatprep.subr.mxu1 %v107_v0  ;;  %v114_v2 = vld [vmem:[#allocation2] sm:$0xff]  ;;  %v115_v4 = vld [vmem:[#allocation2 + $0x8] sm:$0xff]  ;;  %v116_v6 = vld [vmem:[#allocation2 + $0x10] sm:$0xff]  ;;  %s1854_s5 = smov 16   ;;  %s1855_s25 = smov [#allocation13]  }
  0x4a   :  { %1580 = vmatpush3.msra.mxu0 %v107_v0  ;;  %1657 = vmatpush3.msra.mxu1 %v107_v0  ;;  %v118_v3 = vld [vmem:[#allocation5] sm:$0xff]  ;;  %v119_v5 = vld [vmem:[#allocation5 + $0x8] sm:$0xff]  ;;  %v120_v7 = vld [vmem:[#allocation5 + $0x10] sm:$0xff]  ;;  %s1476_s28 = sshll.u32 %s1855_s25, 4  ;;  %s1477_s28 = int_to_ptr.vmem [resolvable:$true] %s1476_s28 }
  0x4b   :  { %1581 = vmatprep.subr.mxu0 %v106_v1  ;;  %1656 = vmatprep.subr.mxu1 %v106_v1  ;;  %v117_v8 = vld [vmem:[#allocation2 + $0x18] sm:$0xff]  ;;  %v108_v27 = vld [vmem:[#allocation8] sm:$0xff]  ;;  %s1815_s29 = scalar_lea.vmem %s1477_s28, 512  ;;  %p1820_p3 = scmp.lt.s32.totalorder %s1477_s28, %s1477_s28 }
  0x4c   :  { %1582 = vmatpush3.msra.mxu0 %v106_v1  ;;  %1658 = vmatpush3.msra.mxu1 %v106_v1  ;;  %v121_v9 = vld [vmem:[#allocation5 + $0x18] sm:$0xff]  ;;  %p1816_p2 = scmp.ne.s32.totalorder %s1477_s28, %s1815_s29  ;;  %p1821_p4 = scmp.lt.s32.totalorder %s1815_s29, %s1815_s29 }
  0x4d   :  { %1583 = vmatprep.mubr.msk.f32.mxu0 %vm122_vm0, %v114_v2  ;;  %1589 = vmatprep.mubr.msk.f32.mxu1 %vm122_vm0, %v118_v3  ;;  %v109_v26 = vld [vmem:[#allocation8 + $0x8] sm:$0xff] }
  0x4e   :  { %1584 = vmatmul.mubr.msk.f32.vlgmr.msra.gmra.mxu0 %vm122_vm0, %v115_v4  ;;  %1590 = vmatmul.mubr.msk.f32.vlgmr.msra.gmra.mxu1 %vm122_vm0, %v119_v5  ;;  %v111_v4 = vld [vmem:[#allocation10 + $0x8] sm:$0xff]  ;;  %v110_v5 = vld [vmem:[#allocation10] sm:$0xff]  ;;  %p1822_p5 = por %p1821_p4, %p1820_p3 }
  0x4f   :  { %1586 = vmatprep.mubr.msk.f32.mxu0 %vm122_vm0, %v116_v6  ;;  %1592 = vmatprep.mubr.msk.f32.mxu1 %vm122_vm0, %v120_v7 }
  0x50   :  { %1595 = vmatprep.subr.mxu1 %v109_v26  ;;  %1623 = vmatprep.subr.mxu0 %v111_v4  ;;  %p1823_p6 = pnand %p1822_p5, %p1816_p2 }
  0x51   :  { %1596 = vmatpush3.msra.mxu1 %v109_v26  ;;  %1624 = vmatpush3.msra.mxu0 %v111_v4 }
  0x52   :  { %1587 = vmatmul.mubr.msk.f32.gmra.mxu0 %vm122_vm0, %v117_v8  ;;  %1593 = vmatmul.mubr.msk.f32.gmra.mxu1 %vm122_vm0, %v121_v9 }
  0x53   :  { %1597 = vmatprep.subr.mxu1 %v108_v27  ;;  %1625 = vmatprep.subr.mxu0 %v110_v5 }
  0x54   :  { %1598 = vmatpush3.msra.mxu1 %v108_v27  ;;  %1626 = vmatpush3.msra.mxu0 %v110_v5 }
 0x10e   :  { %v1585_v10 = vpop.f32.mrf.mxu0  ;;  %v1591_v11 = vpop.f32.mrf.mxu1 }
 0x10f   :  { %v257_v12 = vsub.f32 0.0, %v1591_v11  ;;  %v253_v13 = vsub.f32 0.0, %v1585_v10 }
 0x110   :  { %v213_v14 = vpop.f32.mrf.mxu0  ;;  %v233_v15 = vpop.f32.mrf.mxu1 }
 0x111   :  { %278 = vrot.lane.b32.xlu1 %v257_v12, %s1853_s4  ;;  %270 = vrot.lane.b32.xlu0 %v253_v13, %s1853_s4  ;;  %v252_v17 = vsub.f32 0.0, %v213_v14  ;;  %v256_v21 = vsub.f32 0.0, %v233_v15 }
 0x112   :  { %v1588_v16 = vpop.f32.mrf.mxu0  ;;  %v1594_v19 = vpop.f32.mrf.mxu1 }
 0x113   :  { %v255_v18 = vsub.f32 0.0, %v1588_v16  ;;  %v259_v20 = vsub.f32 0.0, %v1594_v19 }
 0x114   :  { %v223_v22 = vpop.f32.mrf.mxu0  ;;  %v243_v23 = vpop.f32.mrf.mxu1 }
 0x115   :  { %268 = vrot.lane.b32.xlu0 %v252_v17, %s1853_s4  ;;  %274 = vrot.lane.b32.xlu1 %v255_v18, %s1853_s4  ;;  %v254_v24 = vsub.f32 0.0, %v223_v22  ;;  %v258_v25 = vsub.f32 0.0, %v243_v23 }
 0x119   :  { %276 = vrot.lane.b32.xlu0 %v256_v21, %s1853_s4  ;;  %282 = vrot.lane.b32.xlu1 %v259_v20, %s1853_s4 }
 0x11d   :  { %280 = vrot.lane.b32.xlu0 %v258_v25, %s1853_s4  ;;  %272 = vrot.lane.b32.xlu1 %v254_v24, %s1853_s4 }
 0x13b   :  { %292 = vxpose.xlu0.b32.start [1/2] (short) (narrow) %v213_v14, 16 }
 0x13f   :  { %293 = vxpose.xlu0.b32.end [2/2] (short) (narrow) %v1585_v10, 16 }
 0x143   :  { %356 = vxpose.xlu0.b32.start [1/2] (short) (narrow) %v233_v15, 16 }
 0x146   :  { %324 = vxpose.xlu1.b32.start [1/2] (short) (narrow) %v223_v22, 16 }
 0x147   :  { %357 = vxpose.xlu0.b32.end [2/2] (short) (narrow) %v1591_v11, 16 }
 0x14a   :  { %325 = vxpose.xlu1.b32.end [2/2] (short) (narrow) %v1588_v16, 16 }
 0x14b   :  { %388 = vxpose.xlu0.b32.start [1/2] (short) (narrow) %v243_v23, 16 }
 0x14f   :  { %389 = vxpose.xlu0.b32.end [2/2] (short) (narrow) %v1594_v19, 16 }
 0x183   :  { %v279_v28 = vpop.permute.xlu1 %278  ;;  %v271_v29 = vpop.permute.xlu0 %270 }
 0x187   :  { %v269_v30 = vpop.permute.xlu0 %268  ;;  %v275_v31 = vpop.permute.xlu1 %274 }
 0x188   :  { %420 = vxpose.xlu1.b32.start [1/2] (short) (narrow) %v269_v30, 16 }
 0x18b   :  { %v283_v32 = vpop.permute.xlu1 %282  ;;  %v277_v33 = vpop.permute.xlu0 %276 }
 0x18c   :  { %421 = vxpose.xlu1.b32.end [2/2] (short) (narrow) %v271_v29, 16 }
 0x18f   :  { %v273_v34 = vpop.permute.xlu1 %272  ;;  %v281_v35 = vpop.permute.xlu0 %280 }
 0x190   :  { %484 = vxpose.xlu1.b32.start [1/2] (short) (narrow) %v277_v33, 16  ;;  %452 = vxpose.xlu0.b32.start [1/2] (short) (narrow) %v273_v34, 16 }
 0x194   :  { %485 = vxpose.xlu1.b32.end [2/2] (short) (narrow) %v279_v28, 16  ;;  %453 = vxpose.xlu0.b32.end [2/2] (short) (narrow) %v275_v31, 16 }
 0x198   :  { %516 = vxpose.xlu0.b32.start [1/2] (short) (narrow) %v281_v35, 16 }
 0x19c   :  { %517 = vxpose.xlu0.b32.end [2/2] (short) (narrow) %v283_v32, 16 }
 0x1b7   :  { %v308_v36 = vpop.trf.xlu0 }
 0x1b8   :  { %1599 = vmatprep.mubr.msk.f32.mxu1 %vm122_vm0, %v308_v36 }
 0x1bb   :  { %v309_v37 = vpop.trf.xlu0 }
 0x1bc   :  { %1600 = vmatmul.mubr.msk.f32.vlgmr.msra.gmra.mxu1 %vm122_vm0, %v309_v37 }
 0x1bf   :  { %v372_v38 = vpop.trf.xlu0 }
 0x1c2   :  { %v340_v39 = vpop.trf.xlu1 }
 0x1c3   :  { %1602 = vmatprep.mubr.msk.f32.mxu1 %vm122_vm0, %v340_v39  ;;  %v373_v40 = vpop.trf.xlu0 }
 0x1c6   :  { %v341_v41 = vpop.trf.xlu1 }
 0x1c7   :  { %1603 = vmatmul.mubr.msk.f32.gmra.mxu1 %vm122_vm0, %v341_v41  ;;  %v404_v42 = vpop.trf.xlu0 }
 0x1c8   :  { %1605 = vmatprep.mubr.msk.f32.mxu1 %vm122_vm0, %v372_v38 }
 0x1cb   :  { %1606 = vmatmul.mubr.msk.f32.gmra.mxu1 %vm122_vm0, %v373_v40  ;;  %v405_v43 = vpop.trf.xlu0 }
 0x1cc   :  { %1608 = vmatprep.mubr.msk.f32.mxu1 %vm122_vm0, %v404_v42 }
 0x1cf   :  { %1609 = vmatmul.mubr.msk.f32.gmra.mxu1 %vm122_vm0, %v405_v43 }
 0x204   :  { %v436_v44 = vpop.trf.xlu1 }
 0x205   :  { %1611 = vmatprep.mubr.msk.f32.mxu1 %vm122_vm0, %v436_v44 }
 0x208   :  { %v437_v45 = vpop.trf.xlu1 }
 0x209   :  { %1612 = vmatmul.mubr.msk.f32.gmra.mxu1 %vm122_vm0, %v437_v45 }
 0x20c   :  { %v468_v46 = vpop.trf.xlu0  ;;  %v500_v47 = vpop.trf.xlu1 }
 0x20d   :  { %1614 = vmatprep.mubr.msk.f32.mxu1 %vm122_vm0, %v468_v46 }
 0x210   :  { %v469_v48 = vpop.trf.xlu0  ;;  %v501_v49 = vpop.trf.xlu1 }
 0x211   :  { %1615 = vmatmul.mubr.msk.f32.gmra.mxu1 %vm122_vm0, %v469_v48 }
 0x212   :  { %1617 = vmatprep.mubr.msk.f32.mxu1 %vm122_vm0, %v500_v47 }
 0x214   :  { %v532_v50 = vpop.trf.xlu0 }
 0x215   :  { %1618 = vmatmul.mubr.msk.f32.gmra.mxu1 %vm122_vm0, %v501_v49 }
 0x216   :  { %1620 = vmatprep.mubr.msk.f32.mxu1 %vm122_vm0, %v532_v50 }
 0x218   :  { %v533_v51 = vpop.trf.xlu0 }
 0x219   :  { %1621 = vmatmul.mubr.msk.f32.gmra.mxu1 %vm122_vm0, %v533_v51 }
 0x27c   :  { %v1601_v52 = vpop.f32.mrf.mxu1 }
 0x27d   :  { %791 = vrot.lane.b32.xlu0 %v1601_v52, %s1853_s4 }
 0x27e   :  { %v662_v53 = vpop.f32.mrf.mxu1 }
 0x27f   :  { %789 = vrot.lane.b32.xlu1 %v662_v53, %s1853_s4 }
 0x287   :  { %v1961_v54 = vpop.f32.mrf.mxu1 }
 0x289   :  { %v672_v55 = vpop.f32.mrf.mxu1 }
 0x28a   :  { %793 = vrot.lane.b32.xlu0 %v672_v55, %s1853_s4 }
 0x28b   :  { %v1607_v56 = vpop.f32.mrf.mxu1 }
 0x28c   :  { %799 = vrot.lane.b32.xlu1 %v1607_v56, %s1853_s4 }
 0x28d   :  { %v682_v57 = vpop.f32.mrf.mxu1 }
 0x28f   :  { %v1965_v58 = vpop.f32.mrf.mxu1 }
 0x290   :  { %797 = vrot.lane.b32.xlu1 %v682_v57, %s1853_s4 }
 0x291   :  { %v1968_v59 = vpop.f32.mrf.mxu1 }
 0x294   :  { %801 = vrot.lane.b32.xlu1 %v1968_v59, %s1853_s4 }
 0x2c9   :  { %v1613_v60 = vpop.f32.mrf.mxu1 }
 0x2ca   :  { %751 = vrot.lane.b32.xlu1 %v1613_v60, %s1853_s4 }
 0x2cb   :  { %v702_v61 = vpop.f32.mrf.mxu1 }
 0x2ce   :  { %749 = vrot.lane.b32.xlu1 %v702_v61, %s1853_s4 }
 0x2d1   :  { %v1974_v62 = vpop.f32.mrf.mxu1 }
 0x2d3   :  { %v712_v63 = vpop.f32.mrf.mxu1 }
 0x2d4   :  { %753 = vrot.lane.b32.xlu0 %v712_v63, %s1853_s4 }
 0x2d5   :  { %v1619_v0 = vpop.f32.mrf.mxu1 }
 0x2d6   :  { %759 = vrot.lane.b32.xlu1 %v1619_v0, %s1853_s4 }
 0x2d7   :  { %v722_v1 = vpop.f32.mrf.mxu1 }
 0x2d8   :  { %757 = vrot.lane.b32.xlu0 %v722_v1, %s1853_s4 }
 0x2d9   :  { %v1979_v2 = vpop.f32.mrf.mxu1 }
 0x2da   :  { %763 = vrot.lane.b32.xlu1 %v1979_v2, %s1853_s4 }
 0x2db   :  { %v732_v3 = vpop.f32.mrf.mxu1 }
 0x2dc   :  { %755 = vrot.lane.b32.xlu0 %v1974_v62, %s1853_s4 }
 0x2de   :  { %761 = vrot.lane.b32.xlu1 %v732_v3, %s1853_s4 }
 0x2e0   :  { %795 = vrot.lane.b32.xlu0 %v1961_v54, %s1853_s4 }
 0x2e2   :  { %803 = vrot.lane.b32.xlu1 %v1965_v58, %s1853_s4 }
 0x2ef   :  { %v792_v7 = vpop.permute.xlu0 %791 }
 0x2f0   :  { %v814_v9 = vsub.f32 %v1613_v60, %v792_v7 }
 0x2f1   :  { %v790_v6 = vpop.permute.xlu1 %789 }
 0x2f2   :  { %v813_v13 = vsub.f32 %v702_v61, %v790_v6  ;;  %v850_v28 = vmul.f32 %v814_v9, %v814_v9 }
 0x2f4   :  { %v849_v38 = vmul.f32 %v813_v13, %v813_v13 }
 0x2fc   :  { %v794_v15 = vpop.permute.xlu0 %793 }
 0x2fd   :  { %v815_v18 = vsub.f32 %v712_v63, %v794_v15 }
 0x2fe   :  { %v800_v8 = vpop.permute.xlu1 %799 }
 0x2ff   :  { %v818_v10 = vsub.f32 %v1619_v0, %v800_v8 }
 0x301   :  { %v1990_v11 = vmul.f32 %v818_v10, %v814_v9  ;;  %v866_v30 = vmul.f32 %v818_v10, %v818_v10 }
 0x302   :  { %v798_v12 = vpop.permute.xlu1 %797 }
 0x303   :  { %v817_v14 = vsub.f32 %v722_v1, %v798_v12 }
 0x305   :  { %v1992_v16 = vmul.f32 %v817_v14, %v813_v13  ;;  %v865_v41 = vmul.f32 %v817_v14, %v817_v14 }
 0x306   :  { %v802_v17 = vpop.permute.xlu1 %801 }
 0x307   :  { %v819_v19 = vsub.f32 %v732_v3, %v802_v17 }
 0x309   :  { %v1994_v20 = vmul.f32 %v819_v19, %v815_v18  ;;  %v867_v61 = vmul.f32 %v819_v19, %v819_v19 }
 0x33c   :  { %v752_v21 = vpop.permute.xlu1 %751 }
 0x33d   :  { %v1996_v22 = vadd.f32 %v1601_v52, %v752_v21 }
 0x33f   :  { %v846_v26 = vmul.f32 %v1996_v22, %v1996_v22  ;;  %v2005_v31 = vmul.f32 %v818_v10, %v1996_v22 }
 0x340   :  { %v750_v23 = vpop.permute.xlu1 %749 }
 0x341   :  { %v1998_v24 = vadd.f32 %v750_v23, %v662_v53  ;;  %v854_v34 = vadd.f32 %v850_v28, %v846_v26 }
 0x343   :  { %v845_v32 = vmul.f32 %v1998_v24, %v1998_v24  ;;  %v2021_v44 = vmul.f32 %v817_v14, %v1998_v24  ;;  %v858_v49 = vadd.f32 1e-15, %v854_v34 }
 0x345   :  { %v853_v45 = vadd.f32 %v849_v38, %v845_v32 }
 0x346   :  { %v754_v25 = vpop.permute.xlu0 %753 }
 0x347   :  { %v2009_v35 = vadd.f32 %v754_v25, %v672_v55  ;;  %v857_v63 = vadd.f32 1e-15, %v853_v45 }
 0x348   :  { %v760_v27 = vpop.permute.xlu1 %759 }
 0x349   :  { %v2002_v29 = vadd.f32 %v1607_v56, %v760_v27  ;;  %v847_v50 = vmul.f32 %v2009_v35, %v2009_v35  ;;  %v851_v56 = vmul.f32 %v815_v18, %v815_v18  ;;  %v2036_v3 = vmul.f32 %v819_v19, %v2009_v35 }
 0x34a   :  { %v758_v33 = vpop.permute.xlu0 %757 }
 0x34b   :  { %v2012_v36 = vmul.f32 %v814_v9, %v2002_v29  ;;  %v862_v37 = vmul.f32 %v2002_v29, %v2002_v29  ;;  %v2016_v39 = vadd.f32 %v758_v33, %v682_v57  ;;  %v855_v4 = vadd.f32 %v851_v56, %v847_v50 }
 0x34c   :  { %v764_v40 = vpop.permute.xlu1 %763 }
 0x34d   :  { %v842_v42 = vsub.f32 %v2005_v31, %v2012_v36  ;;  %v870_v43 = vadd.f32 %v866_v30, %v862_v37  ;;  %v2024_v46 = vmul.f32 %v813_v13, %v2016_v39  ;;  %v861_v47 = vmul.f32 %v2016_v39, %v2016_v39 }
 0x34e   :  { %v756_v48 = vpop.permute.xlu0 %755  ;;  %v2042_v7 = vadd.f32 %v1965_v58, %v764_v40  ;;  %v859_v15 = vadd.f32 1e-15, %v855_v4 }
 0x34f   :  { %v874_v51 = vadd.f32 1e-15, %v870_v43  ;;  %v841_v52 = vsub.f32 %v2021_v44, %v2024_v46  ;;  %v869_v53 = vadd.f32 %v865_v41, %v861_v47  ;;  %v2039_v5 = vadd.f32 %v1961_v54, %v756_v48 }
 0x350   :  { %v762_v55 = vpop.permute.xlu1 %761  ;;  %v864_v17 = vmul.f32 %v2042_v7, %v2042_v7 }
 0x351   :  { %v878_v57 = vmul.f32 %v874_v51, %v858_v49  ;;  %v2033_v60 = vadd.f32 %v762_v55, %v1968_v59  ;;  %v873_v0 = vadd.f32 1e-15, %v869_v53  ;;  %v848_v58 = vmul.f32 %v2039_v5, %v2039_v5 }
 0x352   :  { %v796_v1 = vpop.permute.xlu0 %795 }
 0x353   :  { %1671 = vrsqrt.f32 %v878_v57  ;;  %v877_v6 = vmul.f32 %v873_v0, %v857_v63  ;;  %v2045_v8 = vmul.f32 %v815_v18, %v2033_v60  ;;  %v863_v59 = vmul.f32 %v2033_v60, %v2033_v60 }
 0x354   :  { %v804_v9 = vpop.permute.xlu1 %803  ;;  %v2050_v10 = vsub.f32 %v1974_v62, %v796_v1  ;;  %vm890_vm1 = vcmp.eq.f32.partialorder %v878_v57, inf  ;;  %v893_v30 = vand.u32 2147483648, %v878_v57  ;;  %vm892_vm2 = vcmp.eq.f32.partialorder %v878_v57, 0.0 }
 0x355   :  { %v2053_v12 = vsub.f32 %v1979_v2, %v804_v9  ;;  %1673 = vrsqrt.f32 %v877_v6  ;;  %v843_v54 = vsub.f32 %v2036_v3, %v2045_v8  ;;  %v871_v13 = vadd.f32 %v867_v61, %v863_v59 }
 0x356   :  { %v852_v14 = vmul.f32 %v2050_v10, %v2050_v10  ;;  %vm883_vm3 = vcmp.eq.f32.partialorder %v877_v6, inf  ;;  %v886_v40 = vand.u32 2147483648, %v877_v6  ;;  %vm885_vm4 = vcmp.eq.f32.partialorder %v877_v6, 0.0 }
 0x357   :  { %v875_v62 = vadd.f32 1e-15, %v871_v13  ;;  %v868_v2 = vmul.f32 %v2053_v12, %v2053_v12  ;;  %v821_v1 = vmul.f32 %v2016_v39, %v1998_v24  ;;  %v828_v31 = vmul.f32 %v2053_v12, %v2050_v10 }
 0x358   :  { %v856_v18 = vadd.f32 %v852_v14, %v848_v58  ;;  %v823_v58 = vmul.f32 %v2033_v60, %v2009_v35 }
 0x359   :  { %v879_v19 = vmul.f32 %v875_v62, %v859_v15  ;;  %v872_v21 = vadd.f32 %v868_v2, %v864_v17 }
 0x35a   :  { %v860_v23 = vadd.f32 1e-15, %v856_v18 }
 0x35b   :  { %1675 = vrsqrt.f32 %v879_v19  ;;  %v876_v25 = vadd.f32 1e-15, %v872_v21  ;;  %vm897_vm5 = vcmp.eq.f32.partialorder %v879_v19, inf  ;;  %v900_v49 = vand.u32 2147483648, %v879_v19 }
 0x35c   :  { %vm899_vm6 = vcmp.eq.f32.partialorder %v879_v19, 0.0 }
 0x35d   :  { %v880_v26 = vmul.f32 %v876_v25, %v860_v23  ;;  %v113_v23 = vld [vmem:[#allocation11 + $0x8] sm:$0xff] }
 0x35e   :  { %1639 = vmatprep.subr.mxu0 %v113_v23 }
 0x35f   :  { %1677 = vrsqrt.f32 %v880_v26  ;;  %vm904_vm7 = vcmp.eq.f32.partialorder %v880_v26, inf  ;;  %v907_v61 = vand.u32 2147483648, %v880_v26  ;;  %vm906_vm8 = vcmp.eq.f32.partialorder %v880_v26, 0.0 }
 0x360   :  { %v1672_v27 = vpop.eup %1671 }
 0x361   :  { %v889_v28 = vmul.f32 %v1672_v27, %v878_v57 }
 0x362   :  { %v1674_v32 = vpop.eup %1673 }
 0x363   :  { %v891_v33 = vsel %vm890_vm1, %v878_v57, %v889_v28  ;;  %v882_v37 = vmul.f32 %v1674_v32, %v877_v6  ;;  %v822_v57 = vmul.f32 %v2002_v29, %v1996_v22  ;;  %v829_v22 = vadd.f32 %v1992_v16, %v821_v1 }
 0x364   :  { %v894_v34 = vsel %vm892_vm2, %v893_v30, %v891_v33  ;;  %v824_v16 = vmul.f32 %v2042_v7, %v2039_v5  ;;  %v112_v30 = vld [vmem:[#allocation11] sm:$0xff] }
 0x365   :  { %v910_v38 = vadd.f32 1e-15, %v894_v34  ;;  %v884_v41 = vsel %vm883_vm3, %v877_v6, %v882_v37  ;;  %v830_v6 = vadd.f32 %v1990_v11, %v822_v57  ;;  %v831_v11 = vadd.f32 %v1994_v20, %v823_v58 }
 0x366   :  { %v887_v43 = vsel %vm885_vm4, %v886_v40, %v884_v41  ;;  %v836_v20 = vmul.f32 %v2053_v12, %v2039_v5 }
 0x367   :  { %1679 = vrcp.f32 %v910_v38  ;;  %v909_v45 = vadd.f32 1e-15, %v887_v43 }
 0x368   :  { %v1676_v47 = vpop.eup %1675 }
 0x369   :  { %v896_v48 = vmul.f32 %v1676_v47, %v879_v19  ;;  %1681 = vrcp.f32 %v909_v45 }
 0x36b   :  { %v898_v50 = vsel %vm897_vm5, %v879_v19, %v896_v48 }
 0x36c   :  { %v1678_v51 = vpop.eup %1677  ;;  %v901_v53 = vsel %vm899_vm6, %v900_v49, %v898_v50 }
 0x36d   :  { %v903_v55 = vmul.f32 %v1678_v51, %v880_v26  ;;  %v911_v56 = vadd.f32 1e-15, %v901_v53 }
 0x36f   :  { %1683 = vrcp.f32 %v911_v56  ;;  %v905_v63 = vsel %vm904_vm7, %v880_v26, %v903_v55 }
 0x370   :  { %v908_v0 = vsel %vm906_vm8, %v907_v61, %v905_v63 }
 0x371   :  { %v912_v4 = vadd.f32 1e-15, %v908_v0 }
 0x373   :  { %1685 = vrcp.f32 %v912_v4 }
 0x374   :  { %v1680_v59 = vpop.eup %1679 }
 0x375   :  { %v918_v9 = vmul.f32 %v1680_v59, %v830_v6  ;;  %v922_v13 = vmul.f32 %v1680_v59, %v842_v42  ;;  %v832_v42 = vadd.f32 %v828_v31, %v824_v16 }
 0x376   :  { %v1682_v29 = vpop.eup %1681 }
 0x377   :  { %v917_v14 = vmul.f32 %v1682_v29, %v829_v22  ;;  %v921_v24 = vmul.f32 %v1682_v29, %v841_v52  ;;  %v840_v52 = vmul.f32 %v2050_v10, %v2042_v7 }
 0x379   :  { %1627 = vmatprep.mubr.msk.f32.mxu0 %vm122_vm0, %v917_v14  ;;  %v844_v60 = vsub.f32 %v836_v20, %v840_v52 }
 0x37a   :  { %1628 = vmatmul.mubr.msk.f32.vlgmr.msra.gmra.mxu0 %vm122_vm0, %v918_v9 }
 0x37b   :  { %1640 = vmatpush3.msra.mxu0 %v113_v23 }
 0x37c   :  { %v1684_v36 = vpop.eup %1683  ;;  %1641 = vmatprep.subr.mxu0 %v112_v30 }
 0x37d   :  { %v919_v39 = vmul.f32 %v1684_v36, %v831_v11  ;;  %v923_v35 = vmul.f32 %v1684_v36, %v843_v54  ;;  %1642 = vmatpush3.msra.mxu0 %v112_v30 }
 0x37f   :  { %1630 = vmatprep.mubr.msk.f32.mxu0 %vm122_vm0, %v919_v39 }
 0x380   :  { %v1686_v44 = vpop.eup %1685 }
 0x381   :  { %v920_v46 = vmul.f32 %v1686_v44, %v832_v42  ;;  %v924_v3 = vmul.f32 %v1686_v44, %v844_v60 }
 0x383   :  { %1631 = vmatmul.mubr.msk.f32.gmra.mxu0 %vm122_vm0, %v920_v46 }
 0x384   :  { %1633 = vmatprep.mubr.msk.f32.mxu0 %vm122_vm0, %v921_v24 }
 0x387   :  { %1634 = vmatmul.mubr.msk.f32.gmra.mxu0 %vm122_vm0, %v922_v13 }
 0x388   :  { %1636 = vmatprep.mubr.msk.f32.mxu0 %vm122_vm0, %v923_v35 }
 0x38b   :  { %1637 = vmatmul.mubr.msk.f32.gmra.mxu0 %vm122_vm0, %v924_v3 }
 0x43a   :  { %v1629_v8 = vpop.f32.mrf.mxu0 }
 0x43c   :  { %v1015_v54 = vpop.f32.mrf.mxu0 }
 0x443   :  { %v1632_v15 = vpop.f32.mrf.mxu0 }
 0x445   :  { %v1025_v17 = vpop.f32.mrf.mxu0 }
 0x447   :  { %v1635_v5 = vpop.f32.mrf.mxu0 }
 0x448   :  { %1076 = vrot.lane.b32.xlu1 %v1635_v5, %s1854_s5 }
 0x449   :  { %v1035_v12 = vpop.f32.mrf.mxu0 }
 0x44a   :  { %1074 = vrot.lane.b32.xlu0 %v1035_v12, %s1854_s5 }
 0x44b   :  { %v1638_v7 = vpop.f32.mrf.mxu0 }
 0x44c   :  { %1080 = vrot.lane.b32.xlu1 %v1638_v7, %s1854_s5 }
 0x44d   :  { %v1045_v10 = vpop.f32.mrf.mxu0 }
 0x44e   :  { %1078 = vrot.lane.b32.xlu0 %v1045_v10, %s1854_s5 }
 0x450   :  { %1060 = vrot.lane.b32.xlu1 %v1635_v5, %s1853_s4 }
 0x452   :  { %1058 = vrot.lane.b32.xlu0 %v1035_v12, %s1853_s4 }
 0x454   :  { %1064 = vrot.lane.b32.xlu1 %v1638_v7, %s1853_s4 }
 0x456   :  { %1062 = vrot.lane.b32.xlu0 %v1045_v10, %s1853_s4 }
 0x4ba   :  { %v1077_v62 = vpop.permute.xlu1 %1076 }
 0x4bb   :  { %v1087_v2 = vadd.f32 %v1629_v8, %v1077_v62 }
 0x4bc   :  { %v1075_v18 = vpop.permute.xlu0 %1074 }
 0x4bd   :  { %v1086_v19 = vadd.f32 %v1075_v18, %v1015_v54  ;;  %1096 = vrot.lane.b32.xlu1 %v1087_v2, %s1853_s4 }
 0x4be   :  { %v1081_v21 = vpop.permute.xlu1 %1080 }
 0x4bf   :  { %v1089_v25 = vadd.f32 %v1632_v15, %v1081_v21  ;;  %1094 = vrot.lane.b32.xlu0 %v1086_v19, %s1853_s4 }
 0x4c0   :  { %v1079_v26 = vpop.permute.xlu0 %1078 }
 0x4c1   :  { %v1088_v27 = vadd.f32 %v1079_v26, %v1025_v17  ;;  %1100 = vrot.lane.b32.xlu1 %v1089_v25, %s1853_s4 }
 0x4c2   :  { %v1061_v33 = vpop.permute.xlu1 %1060 }
 0x4c3   :  { %1098 = vrot.lane.b32.xlu0 %v1088_v27, %s1853_s4  ;;  %v1071_v34 = vsub.f32 %v1629_v8, %v1061_v33 }
 0x4c4   :  { %v1059_v28 = vpop.permute.xlu0 %1058 }
 0x4c5   :  { %v1070_v32 = vsub.f32 %v1015_v54, %v1059_v28 }
 0x4c6   :  { %v1065_v40 = vpop.permute.xlu1 %1064 }
 0x4c7   :  { %v1073_v41 = vsub.f32 %v1632_v15, %v1065_v40 }
 0x4c8   :  { %v1063_v37 = vpop.permute.xlu0 %1062 }
 0x4c9   :  { %v1072_v38 = vsub.f32 %v1025_v17, %v1063_v37 }
 0x4e1   :  { %1106 = vxpose.xlu0.b32.start [1/2] (short) (narrow) %v1070_v32, 16 }
 0x4e5   :  { %1107 = vxpose.xlu0.b32.end [2/2] (short) (narrow) %v1071_v34, 16 }
 0x4ea   :  { %1138 = vxpose.xlu1.b32.start [1/2] (short) (narrow) %v1072_v38, 16 }
 0x4ee   :  { %1139 = vxpose.xlu1.b32.end [2/2] (short) (narrow) %v1073_v41, 16 }
 0x52f   :  { %v1097_v45 = vpop.permute.xlu1 %1096 }
 0x531   :  { %v1095_v43 = vpop.permute.xlu0 %1094 }
 0x532   :  { %1170 = vxpose.xlu0.b32.start [1/2] (short) (narrow) %v1095_v43, 16 }
 0x533   :  { %v1101_v48 = vpop.permute.xlu1 %1100 }
 0x535   :  { %v1099_v47 = vpop.permute.xlu0 %1098 }
 0x536   :  { %1171 = vxpose.xlu0.b32.end [2/2] (short) (narrow) %v1097_v45, 16 }
 0x53a   :  { %1202 = vxpose.xlu0.b32.start [1/2] (short) (narrow) %v1099_v47, 16 }
 0x53e   :  { %1203 = vxpose.xlu0.b32.end [2/2] (short) (narrow) %v1101_v48, 16 }
 0x55d   :  { %v1122_v49 = vpop.trf.xlu0 }
 0x55e   :  { %1643 = vmatprep.mubr.msk.f32.mxu0 %vm122_vm0, %v1122_v49 }
 0x561   :  { %v1123_v50 = vpop.trf.xlu0 }
 0x562   :  { %1644 = vmatmul.mubr.msk.f32.vlgmr.msra.gmra.mxu0 %vm122_vm0, %v1123_v50 }
 0x566   :  { %v1154_v51 = vpop.trf.xlu1 }
 0x567   :  { %1646 = vmatprep.mubr.msk.f32.mxu0 %vm122_vm0, %v1154_v51 }
 0x56a   :  { %v1155_v53 = vpop.trf.xlu1 }
 0x56b   :  { %1647 = vmatmul.mubr.msk.f32.gmra.mxu0 %vm122_vm0, %v1155_v53 }
 0x5ae   :  { %v1186_v55 = vpop.trf.xlu0 }
 0x5af   :  { %1649 = vmatprep.mubr.msk.f32.mxu0 %vm122_vm0, %v1186_v55 }
 0x5b2   :  { %v1187_v56 = vpop.trf.xlu0 }
 0x5b3   :  { %1650 = vmatmul.mubr.msk.f32.gmra.mxu0 %vm122_vm0, %v1187_v56 }
 0x5b6   :  { %v1218_v57 = vpop.trf.xlu0 }
 0x5b7   :  { %1652 = vmatprep.mubr.msk.f32.mxu0 %vm122_vm0, %v1218_v57 }
 0x5ba   :  { %v1219_v61 = vpop.trf.xlu0 }
 0x5bb   :  { %1653 = vmatmul.mubr.msk.f32.gmra.mxu0 %vm122_vm0, %v1219_v61 }
 0x622   :  { %v1645_v63 = vpop.f32.mrf.mxu0 }
 0x624   :  { %v1324_v0 = vpop.f32.mrf.mxu0 }
 0x62b   :  { %v1648_v1 = vpop.f32.mrf.mxu0 }
 0x62d   :  { %v1334_v4 = vpop.f32.mrf.mxu0 }
 0x673   :  { %v1651_v6 = vpop.f32.mrf.mxu0 }
 0x674   :  { %1389 = vrot.lane.b32.xlu0 %v1651_v6, %s1854_s5 }
 0x675   :  { %v1344_v59 = vpop.f32.mrf.mxu0 }
 0x676   :  { %1387 = vrot.lane.b32.xlu1 %v1344_v59, %s1854_s5 }
 0x67b   :  { %v1654_v9 = vpop.f32.mrf.mxu0 }
 0x67d   :  { %v1354_v13 = vpop.f32.mrf.mxu0 }
 0x67e   :  { %1371 = vrot.lane.b32.xlu0 %v1354_v13, %s1853_s4  ;;  %1391 = vrot.lane.b32.xlu1 %v1354_v13, %s1854_s5 }
 0x682   :  { %1393 = vrot.lane.b32.xlu1 %v1654_v9, %s1854_s5 }
 0x686   :  { %1367 = vrot.lane.b32.xlu1 %v1344_v59, %s1853_s4 }
 0x68a   :  { %1369 = vrot.lane.b32.xlu1 %v1651_v6, %s1853_s4 }
 0x68e   :  { %1373 = vrot.lane.b32.xlu1 %v1654_v9, %s1853_s4 }
 0x6e6   :  { %v1390_v22 = vpop.permute.xlu0 %1389 }
 0x6e7   :  { %v1400_v29 = vadd.f32 %v1645_v63, %v1390_v22 }
 0x6e8   :  { %v1388_v58 = vpop.permute.xlu1 %1387 }
 0x6e9   :  { %v1404_v14 = vmul.f32 0.00390625, %v1400_v29  ;;  %v1399_v24 = vadd.f32 %v1388_v58, %v1324_v0 }
 0x6eb   :  { %v1412_v11 = vmul.f32 %v1404_v14, %v1404_v14  ;;  %v1403_v31 = vmul.f32 0.00390625, %v1399_v24 }
 0x6ed   :  { %v1411_v36 = vmul.f32 %v1403_v31, %v1403_v31  ;;  %1421 = vrot.lane.b32.xlu1 %v1412_v11, %s1853_s4 }
 0x6ef   :  { %1419 = vrot.lane.b32.xlu0 %v1411_v36, %s1853_s4 }
 0x6f0   :  { %v1392_v16 = vpop.permute.xlu1 %1391  ;;  %v1372_v12 = vpop.permute.xlu0 %1371 }
 0x6f1   :  { %v1401_v39 = vadd.f32 %v1392_v16, %v1334_v4  ;;  %v1381_v62 = vsub.f32 %v1334_v4, %v1372_v12 }
 0x6f3   :  { %v1405_v35 = vmul.f32 0.00390625, %v1401_v39  ;;  %v1385_v25 = vmul.f32 0.00390625, %v1381_v62 }
 0x6f4   :  { %v1394_v42 = vpop.permute.xlu1 %1393 }
 0x6f5   :  { %v1413_v44 = vmul.f32 %v1405_v35, %v1405_v35  ;;  %v1402_v46 = vadd.f32 %v1648_v1, %v1394_v42  ;;  %v1409_v28 = vmul.f32 %v1385_v25, %v1385_v25 }
 0x6f7   :  { %v1406_v20 = vmul.f32 0.00390625, %v1402_v46  ;;  %1423 = vrot.lane.b32.xlu0 %v1413_v44, %s1853_s4 }
 0x6f8   :  { %v1368_v60 = vpop.permute.xlu1 %1367 }
 0x6f9   :  { %v1414_v52 = vmul.f32 %v1406_v20, %v1406_v20  ;;  %v1379_v54 = vsub.f32 %v1324_v0, %v1368_v60 }
 0x6fb   :  { %1425 = vrot.lane.b32.xlu1 %v1414_v52, %s1853_s4  ;;  %v1383_v5 = vmul.f32 0.00390625, %v1379_v54 }
 0x6fc   :  { %v1370_v3 = vpop.permute.xlu1 %1369 }
 0x6fd   :  { %v1380_v8 = vsub.f32 %v1645_v63, %v1370_v3  ;;  %v1407_v2 = vmul.f32 %v1383_v5, %v1383_v5 }
 0x6ff   :  { %v1384_v15 = vmul.f32 0.00390625, %v1380_v8 }
 0x700   :  { %v1374_v17 = vpop.permute.xlu1 %1373 }
 0x701   :  { %v1408_v7 = vmul.f32 %v1384_v15, %v1384_v15  ;;  %v1382_v26 = vsub.f32 %v1648_v1, %v1374_v17 }
 0x703   :  { %v1386_v30 = vmul.f32 0.00390625, %v1382_v26 }
 0x705   :  { %v1410_v34 = vmul.f32 %v1386_v30, %v1386_v30 }
 0x75f   :  { %v1422_v10 = vpop.permute.xlu1 %1421 }
 0x760   :  { %v1432_v18 = vadd.f32 %v1422_v10, %v1408_v7 }
 0x761   :  { %v1420_v19 = vpop.permute.xlu0 %1419 }
 0x762   :  { %v1436_v21 = vadd.f32 1e-15, %v1432_v18  ;;  %v1431_v23 = vadd.f32 %v1420_v19, %v1407_v2 }
 0x764   :  { %1687 = vrsqrt.f32 %v1436_v21  ;;  %v1435_v27 = vadd.f32 1e-15, %v1431_v23  ;;  %vm1448_vm9 = vcmp.eq.f32.partialorder %v1436_v21, inf  ;;  %v1451_v48 = vand.u32 2147483648, %v1436_v21 }
 0x765   :  { %vm1450_vm10 = vcmp.eq.f32.partialorder %v1436_v21, 0.0 }
 0x766   :  { %1689 = vrsqrt.f32 %v1435_v27  ;;  %vm1441_vm11 = vcmp.eq.f32.partialorder %v1435_v27, inf  ;;  %v1444_v51 = vand.u32 2147483648, %v1435_v27  ;;  %vm1443_vm12 = vcmp.eq.f32.partialorder %v1435_v27, 0.0 }
 0x769   :  { %v1424_v32 = vpop.permute.xlu0 %1423 }
 0x76a   :  { %v1433_v33 = vadd.f32 %v1424_v32, %v1409_v28 }
 0x76c   :  { %v1437_v37 = vadd.f32 1e-15, %v1433_v33 }
 0x76d   :  { %v1426_v38 = vpop.permute.xlu1 %1425 }
 0x76e   :  { %1691 = vrsqrt.f32 %v1437_v37  ;;  %v1434_v40 = vadd.f32 %v1426_v38, %v1410_v34  ;;  %vm1455_vm13 = vcmp.eq.f32.partialorder %v1437_v37, inf  ;;  %v1458_v63 = vand.u32 2147483648, %v1437_v37 }
 0x76f   :  { %vm1457_vm14 = vcmp.eq.f32.partialorder %v1437_v37, 0.0 }
 0x770   :  { %v1438_v41 = vadd.f32 1e-15, %v1434_v40 }
 0x771   :  { %v1688_v43 = vpop.eup %1687 }
 0x772   :  { %1693 = vrsqrt.f32 %v1438_v41  ;;  %v1447_v45 = vmul.f32 %v1688_v43, %v1436_v21  ;;  %vm1462_vm15 = vcmp.eq.f32.partialorder %v1438_v41, inf  ;;  %v1465_v59 = vand.u32 2147483648, %v1438_v41 }
 0x773   :  { %v1690_v47 = vpop.eup %1689  ;;  %vm1464_vm1 = vcmp.eq.f32.partialorder %v1438_v41, 0.0 }
 0x774   :  { %v1440_v49 = vmul.f32 %v1690_v47, %v1435_v27  ;;  %v1449_v50 = vsel %vm1448_vm9, %v1436_v21, %v1447_v45 }
 0x775   :  { %v1452_v53 = vsel %vm1450_vm10, %v1451_v48, %v1449_v50 }
 0x776   :  { %v1442_v55 = vsel %vm1441_vm11, %v1435_v27, %v1440_v49  ;;  %1468 = vst.msk [vmem:[#allocation13 + $0x8] sm:$0xff] %vm122_vm0, %v1452_v53 }
 0x777   :  { %v1445_v56 = vsel %vm1443_vm12, %v1444_v51, %v1442_v55 }
 0x778   :  { %1467 = vst.msk [vmem:[#allocation13] sm:$0xff] %vm122_vm0, %v1445_v56 }
 0x77b   :  { %v1692_v57 = vpop.eup %1691 }
 0x77c   :  { %v1454_v61 = vmul.f32 %v1692_v57, %v1437_v37 }
 0x77e   :  { %v1456_v0 = vsel %vm1455_vm13, %v1437_v37, %v1454_v61 }
 0x77f   :  { %v1694_v1 = vpop.eup %1693  ;;  %v1459_v4 = vsel %vm1457_vm14, %v1458_v63, %v1456_v0 }
 0x780   :  { %v1461_v6 = vmul.f32 %v1694_v1, %v1438_v41  ;;  %1469 = vst.msk [vmem:[#allocation13 + $0x10] sm:$0xff] %vm122_vm0, %v1459_v4 }
 0x782   :  { %v1463_v9 = vsel %vm1462_vm15, %v1438_v41, %v1461_v6 }
 0x783   :  { %v1466_v13 = vsel %vm1464_vm1, %v1465_v59, %v1463_v9 }
 0x784   :  { %1470 = vst.msk [vmem:[#allocation13 + $0x18] sm:$0xff] %vm122_vm0, %v1466_v13 }
 0x785   :  { %1826 = shalt.err (!%p1823_p6)
}
 0x786   :  { %1482 = dma.vmem_to_hbm [thread:$0]  %s1477_s28, 512, %s2147_s6, [#allocation4], %s1847_s26, %s1847_s26, %s1848_s27  }
 0x787   :  { %1843 = dma.done.wait [#allocation4], 512  }
 0x788   :  { %1844 = vsyncadd [#allocation4], 4294966784 }
 0x789   :  { %1486 = vsyncpa [#allocation3], 1 }
 0x78a   :  { %1487 = vsyncpa [#allocation6], 1 }
 0x78b   :  { %1488 = vsyncpa [#allocation9], 1 }
 0x78c   :  { %1489 = vsyncpa [#allocation12], 1 }
 0x78d   :  { %1490 = vsyncpa [#allocation4], 1 }

</bundles_post_ra>
